<compile_context>
chip_gen: v7x
topology: tpu7x:2x2x1
jax: 0.10.0
libtpu: 0.0.40
codegen_flags: <defaults>
</compile_context>

<pallas_src>
import jax
import jax.numpy as jnp
from jax.experimental import pallas as pl
from jax.experimental.pallas import tpu as pltpu

LANE = 128


def _round_up(n, m):
    return ((n + m - 1) // m) * m


def _vae_kernel(x_ref, w_enc_ref, b_enc_ref,
                w_ms_ref, b_ms_ref,
                eps_ref,
                w_d1_ref, b_d1_ref,
                w_d2_ref, b_d2_ref,
                rex_ref, musig_ref):
    bf16 = jnp.bfloat16
    f32 = jnp.float32
    lat = eps_ref.shape[1]                                    # static (32)

    x = x_ref[...]                                            # (TM, img) bf16

    # --- Encoder: h = relu(x @ W_enc + b_enc) ---
    h = jnp.dot(x, w_enc_ref[...], preferred_element_type=f32)
    h = jnp.maximum(h + b_enc_ref[...], 0.0)                  # f32 activation

    # --- Fused mu/sigma projection (lane-dense, width 128) ---
    musig = jnp.dot(h.astype(bf16), w_ms_ref[...], preferred_element_type=f32)
    musig = musig + b_ms_ref[...]                             # (TM, 128)
    musig_ref[...] = musig.astype(musig_ref.dtype)

    mu = musig[:, :lat]                                       # (TM, latent)
    sigma = musig[:, lat:2 * lat]                             # (TM, latent)

    # --- Reparameterization ---
    z = mu + eps_ref[...] * sigma                             # (TM, latent) f32

    # --- Decoder ---
    h2 = jnp.dot(z.astype(bf16), w_d1_ref[...], preferred_element_type=f32)
    h2 = jnp.maximum(h2 + b_d1_ref[...], 0.0)

    logits = jnp.dot(h2.astype(bf16), w_d2_ref[...], preferred_element_type=f32)
    logits = logits + b_d2_ref[...]                           # (TM, img)
    rex_ref[...] = jax.nn.sigmoid(logits).astype(rex_ref.dtype)


def prepare_params(params):
    """One-time (setup-time) conversion of raw f32 params into the kernel's
    layout: bf16 weights, f32 biases, mu/sigma fused into a 128-wide head.
    Doing this once avoids re-materializing ~1 MB of weights every forward."""
    bf16, f32 = jnp.bfloat16, jnp.float32
    hidden = params["w_enc"].shape[1]
    latent = params["w_mu"].shape[1]
    ms_pad = _round_up(2 * latent, LANE)                      # 64 -> 128

    w_ms = jnp.zeros((hidden, ms_pad), bf16)
    w_ms = w_ms.at[:, :latent].set(params["w_mu"].astype(bf16))
    w_ms = w_ms.at[:, latent:2 * latent].set(params["w_sig"].astype(bf16))
    b_ms = jnp.zeros((1, ms_pad), f32)
    b_ms = b_ms.at[:, :latent].set(params["b_mu"].astype(f32))
    b_ms = b_ms.at[:, latent:2 * latent].set(params["b_sig"].astype(f32))

    return dict(
        w_enc=params["w_enc"].astype(bf16),                   # (img, hidden)
        b_enc=params["b_enc"].astype(f32),                    # (1, hidden)
        w_ms=w_ms, b_ms=b_ms,                                 # (hidden, 128)
        w_d1=params["w_d1"].astype(bf16),                     # (latent, hidden)
        b_d1=params["b_d1"].astype(f32),                      # (1, hidden)
        w_d2=params["w_d2"].astype(bf16),                     # (hidden, img)
        b_d2=params["b_d2"].astype(f32),                      # (1, img)
    )


def vae_forward(x_img, kp, eps):
    """x_img: (B, 1, 28, 28) float32 (NCHW); kp: prepare_params() output.
    Returns (re_x, mu, sigma)."""
    B = x_img.shape[0]
    img = kp["w_enc"].shape[0]                                # 784
    latent = kp["w_d1"].shape[0]                              # 32
    hidden = kp["w_enc"].shape[1]                             # 256
    ms_pad = kp["w_ms"].shape[1]                              # 128

    bf16, f32 = jnp.bfloat16, jnp.float32

    # x enters the kernel as bf16 (it is quantized before the MXU anyway).
    x = x_img.reshape(B, -1).astype(bf16)                     # (B, img)
    eps_f = eps.astype(f32)

    # Batch tiling: cap 256 (fills the 256-row MXU on v6e/v7x, amortizes
    # per-step overhead); tiny batches use a single grid step so the
    # resident weights are DMA'd exactly once.
    TM = min(256, _round_up(B, 8))
    B_pad = _round_up(B, TM)

    if B_pad == B:                                            # no pad copies
        x_p, eps_p = x, eps_f
    else:
        x_p = jnp.zeros((B_pad, img), bf16).at[:B].set(x)
        eps_p = jnp.zeros((B_pad, latent), f32).at[:B].set(eps_f)

    inputs = (x_p, kp["w_enc"], kp["b_enc"], kp["w_ms"], kp["b_ms"], eps_p,
              kp["w_d1"], kp["b_d1"], kp["w_d2"], kp["b_d2"])

    def tiled(shape):     # per-batch-tile operands/outputs
        return pl.BlockSpec(shape, lambda i: (i, 0))

    def resident(a):      # weights/biases: constant index map -> VMEM resident
        return pl.BlockSpec(a.shape, lambda i: (0, 0))

    in_specs = [
        tiled((TM, img)),          # x (bf16)
        resident(kp["w_enc"]), resident(kp["b_enc"]),
        resident(kp["w_ms"]), resident(kp["b_ms"]),
        tiled((TM, latent)),       # eps
        resident(kp["w_d1"]), resident(kp["b_d1"]),
        resident(kp["w_d2"]), resident(kp["b_d2"]),
    ]
    out_specs = (
        tiled((TM, img)),          # re_x, unpadded 784 (full-array last dim)
        tiled((TM, ms_pad)),       # [mu | sigma | 0-pad] (lane-dense)
    )
    out_shapes = (
        jax.ShapeDtypeStruct((B_pad, img), f32),
        jax.ShapeDtypeStruct((B_pad, ms_pad), f32),
    )

    # Advisory cost for XLA's scheduler around the custom call.
    flops = 2 * B_pad * (img * hidden + hidden * ms_pad
                         + latent * hidden + hidden * img)
    transcendentals = B_pad * img                             # sigmoid
    weight_bytes = 2 * (kp["w_enc"].size + kp["w_ms"].size
                        + kp["w_d1"].size + kp["w_d2"].size) \
                 + 4 * (kp["b_enc"].size + kp["b_ms"].size
                        + kp["b_d1"].size + kp["b_d2"].size)
    act_bytes = B_pad * (2 * img + 4 * latent + 4 * img + 4 * ms_pad)
    cost = pl.CostEstimate(flops=flops, transcendentals=transcendentals,
                           bytes_accessed=weight_bytes + act_bytes)

    rex, musig = pl.pallas_call(
        _vae_kernel,
        grid=(B_pad // TM,),
        in_specs=in_specs,
        out_specs=out_specs,
        out_shape=out_shapes,
        compiler_params=pltpu.CompilerParams(
            dimension_semantics=("parallel",),
            vmem_limit_bytes=32 << 20,
        ),
        cost_estimate=cost,
    )(*inputs)

    if B_pad != B:
        rex = rex[:B]
        musig = musig[:B]
    mu = musig[:, :latent]
    sigma = musig[:, latent:2 * latent]
    return rex, mu, sigma


def init_params(key, img_size=28 * 28, hidden_size=256, latent_size=32):
    """Deterministic synthetic parameter init (shapes from the PyTorch module)."""
    keys = jax.random.split(key, 10)

    def lin(kw, kb, fan_in, fan_out):
        bound = 1.0 / jnp.sqrt(fan_in)
        w = jax.random.uniform(kw, (fan_in, fan_out), jnp.float32, -bound, bound)
        b = jax.random.uniform(kb, (1, fan_out), jnp.float32, -bound, bound)
        return w, b

    w_enc, b_enc = lin(keys[0], keys[1], img_size, hidden_size)
    w_mu, b_mu = lin(keys[2], keys[3], hidden_size, latent_size)
    w_sig, b_sig = lin(keys[4], keys[5], hidden_size, latent_size)
    w_d1, b_d1 = lin(keys[6], keys[7], latent_size, hidden_size)
    w_d2, b_d2 = lin(keys[8], keys[9], hidden_size, img_size)
    return dict(w_enc=w_enc, b_enc=b_enc, w_mu=w_mu, b_mu=b_mu,
                w_sig=w_sig, b_sig=b_sig, w_d1=w_d1, b_d1=b_d1,
                w_d2=w_d2, b_d2=b_d2)


def vae_forward_ref(x_img, params, eps):
    """Pure-JAX reference using the same bf16-weight / f32-accumulate recipe."""
    bf16 = jnp.bfloat16
    x = x_img.reshape(x_img.shape[0], -1).astype(jnp.float32)

    def mm(a, w):
        return jnp.dot(a.astype(bf16), w.astype(bf16),
                       preferred_element_type=jnp.float32)

    h = jax.nn.relu(mm(x, params["w_enc"]) + params["b_enc"])
    mu = mm(h, params["w_mu"]) + params["b_mu"]
    sigma = mm(h, params["w_sig"]) + params["b_sig"]
    z = mu + eps * sigma
    h2 = jax.nn.relu(mm(z, params["w_d1"]) + params["b_d1"])
    re_x = jax.nn.sigmoid(mm(h2, params["w_d2"]) + params["b_d2"])
    return re_x, mu, sigma


if __name__ == "__main__":
    key = jax.random.PRNGKey(0)
    k_x, k_eps, k_p = jax.random.split(key, 3)

    B, H, W = 8, 28, 28           # 'mnist' -> img_size = 784
    latent_size, hidden_size = 32, 256

    x_img = jax.random.uniform(k_x, (B, 1, H, W), jnp.float32)     # NCHW
    eps = jax.random.normal(k_eps, (B, latent_size), jnp.float32)  # randn_like(sigma)
    params = init_params(k_p, img_size=H * W, hidden_size=hidden_size,
                         latent_size=latent_size)

    # One-time weight layout/cast (setup cost, not per-forward).
    kparams = prepare_params(params)

    re_x, mu, sigma = jax.block_until_ready(vae_forward(x_img, kparams, eps))

    # sanity check against pure-JAX reference (same bf16 weight quantization)
    re_x_r, mu_r, sigma_r = vae_forward_ref(x_img, params, eps)
    assert re_x.shape == (B, H * W) and mu.shape == (B, latent_size)
    assert sigma.shape == (B, latent_size)
    assert jnp.allclose(re_x, re_x_r, atol=2e-3, rtol=2e-3)
    assert jnp.allclose(mu, mu_r, atol=2e-3, rtol=2e-3)
    assert jnp.allclose(sigma, sigma_r, atol=2e-3, rtol=2e-3)

    print("KERNEL_OK")
</pallas_src>

<mosaic_0001>
module attributes {stable_mosaic.version = 11 : i64} {
  func.func @_vae_kernel(%arg0: i32, %arg1: memref<8x784xbf16, #tpu.memory_space<vmem>>, %arg2: memref<784x256xbf16, #tpu.memory_space<vmem>>, %arg3: memref<1x256xf32, #tpu.memory_space<vmem>>, %arg4: memref<256x128xbf16, #tpu.memory_space<vmem>>, %arg5: memref<1x128xf32, #tpu.memory_space<vmem>>, %arg6: memref<8x32xf32, #tpu.memory_space<vmem>>, %arg7: memref<32x256xbf16, #tpu.memory_space<vmem>>, %arg8: memref<1x256xf32, #tpu.memory_space<vmem>>, %arg9: memref<256x784xbf16, #tpu.memory_space<vmem>>, %arg10: memref<1x784xf32, #tpu.memory_space<vmem>>, %arg11: memref<8x784xf32, #tpu.memory_space<vmem>>, %arg12: memref<8x128xf32, #tpu.memory_space<vmem>>) attributes {dimension_semantics = [#tpu.dimension_semantics<parallel>], iteration_bounds = array<i64: 1>, scalar_prefetch = 0 : i64, scratch_operands = 0 : i64, tpu.core_type = #tpu.core_type<tc>, window_params = [{transform_indices = @transform_0, window_bounds = array<i64: 8, 784>}, {pipeline_mode = #tpu.pipeline_mode<synchronous>, transform_indices = @transform_1, window_bounds = array<i64: 784, 256>}, {pipeline_mode = #tpu.pipeline_mode<synchronous>, transform_indices = @transform_2, window_bounds = array<i64: 1, 256>}, {pipeline_mode = #tpu.pipeline_mode<synchronous>, transform_indices = @transform_3, window_bounds = array<i64: 256, 128>}, {pipeline_mode = #tpu.pipeline_mode<synchronous>, transform_indices = @transform_4, window_bounds = array<i64: 1, 128>}, {transform_indices = @transform_5, window_bounds = array<i64: 8, 32>}, {pipeline_mode = #tpu.pipeline_mode<synchronous>, transform_indices = @transform_6, window_bounds = array<i64: 32, 256>}, {pipeline_mode = #tpu.pipeline_mode<synchronous>, transform_indices = @transform_7, window_bounds = array<i64: 1, 256>}, {pipeline_mode = #tpu.pipeline_mode<synchronous>, transform_indices = @transform_8, window_bounds = array<i64: 256, 784>}, {pipeline_mode = #tpu.pipeline_mode<synchronous>, transform_indices = @transform_9, window_bounds = array<i64: 1, 784>}, {transform_indices = @transform_10, window_bounds = array<i64: 8, 784>}, {transform_indices = @transform_11, window_bounds = array<i64: 8, 128>}]} {
    %c0 = arith.constant 0 : index
    %c0_0 = arith.constant 0 : index
    %0 = vector.load %arg1[%c0, %c0_0] : memref<8x784xbf16, #tpu.memory_space<vmem>>, vector<8x784xbf16>
    %c0_1 = arith.constant 0 : index
    %c0_2 = arith.constant 0 : index
    %1 = vector.load %arg2[%c0_1, %c0_2] : memref<784x256xbf16, #tpu.memory_space<vmem>>, vector<784x256xbf16>
    %cst = arith.constant dense<0.000000e+00> : vector<8x256xf32>
    %2 = tpu.matmul %0, %1, %cst {dimension_numbers = #tpu.dot_dimension_numbers<[1], [0], [0], [1], [0, 0, 1, 1], [], []>} : vector<8x784xbf16>, vector<784x256xbf16>, vector<8x256xf32> -> vector<8x256xf32>
    %c0_3 = arith.constant 0 : index
    %c0_4 = arith.constant 0 : index
    %3 = vector.load %arg3[%c0_3, %c0_4] : memref<1x256xf32, #tpu.memory_space<vmem>>, vector<1x256xf32>
    %4 = vector.broadcast %3 : vector<1x256xf32> to vector<8x256xf32>
    %5 = arith.addf %2, %4 : vector<8x256xf32>
    %cst_5 = arith.constant 0.000000e+00 : f32
    %6 = vector.broadcast %cst_5 : f32 to vector<8x256xf32>
    %7 = arith.maximumf %5, %6 : vector<8x256xf32>
    %8 = arith.truncf %7 : vector<8x256xf32> to vector<8x256xbf16>
    %c0_6 = arith.constant 0 : index
    %c0_7 = arith.constant 0 : index
    %9 = vector.load %arg4[%c0_6, %c0_7] : memref<256x128xbf16, #tpu.memory_space<vmem>>, vector<256x128xbf16>
    %cst_8 = arith.constant dense<0.000000e+00> : vector<8x128xf32>
    %10 = tpu.matmul %8, %9, %cst_8 {dimension_numbers = #tpu.dot_dimension_numbers<[1], [0], [0], [1], [0, 0, 1, 1], [], []>} : vector<8x256xbf16>, vector<256x128xbf16>, vector<8x128xf32> -> vector<8x128xf32>
    %c0_9 = arith.constant 0 : index
    %c0_10 = arith.constant 0 : index
    %11 = vector.load %arg5[%c0_9, %c0_10] : memref<1x128xf32, #tpu.memory_space<vmem>>, vector<1x128xf32>
    %12 = vector.broadcast %11 : vector<1x128xf32> to vector<8x128xf32>
    %13 = arith.addf %10, %12 : vector<8x128xf32>
    %c0_11 = arith.constant 0 : index
    %c0_12 = arith.constant 0 : index
    %14 = vector.load %arg12[%c0_11, %c0_12] : memref<8x128xf32, #tpu.memory_space<vmem>>, vector<8x128xf32>
    tpu.vector_store %arg12[%c0_11, %c0_12], %13 {strides = array<i32>} : memref<8x128xf32, #tpu.memory_space<vmem>>, vector<8x128xf32>,
    %15 = vector.extract_strided_slice %13 {offsets = [0, 0], sizes = [8, 32], strides = [1, 1]} : vector<8x128xf32> to vector<8x32xf32>
    %16 = vector.extract_strided_slice %13 {offsets = [0, 32], sizes = [8, 32], strides = [1, 1]} : vector<8x128xf32> to vector<8x32xf32>
    %c0_13 = arith.constant 0 : index
    %c0_14 = arith.constant 0 : index
    %17 = vector.load %arg6[%c0_13, %c0_14] : memref<8x32xf32, #tpu.memory_space<vmem>>, vector<8x32xf32>
    %18 = arith.mulf %17, %16 : vector<8x32xf32>
    %19 = arith.addf %15, %18 : vector<8x32xf32>
    %20 = arith.truncf %19 : vector<8x32xf32> to vector<8x32xbf16>
    %c0_15 = arith.constant 0 : index
    %c0_16 = arith.constant 0 : index
    %21 = vector.load %arg7[%c0_15, %c0_16] : memref<32x256xbf16, #tpu.memory_space<vmem>>, vector<32x256xbf16>
    %cst_17 = arith.constant dense<0.000000e+00> : vector<8x256xf32>
    %22 = tpu.matmul %20, %21, %cst_17 {dimension_numbers = #tpu.dot_dimension_numbers<[1], [0], [0], [1], [0, 0, 1, 1], [], []>} : vector<8x32xbf16>, vector<32x256xbf16>, vector<8x256xf32> -> vector<8x256xf32>
    %c0_18 = arith.constant 0 : index
    %c0_19 = arith.constant 0 : index
    %23 = vector.load %arg8[%c0_18, %c0_19] : memref<1x256xf32, #tpu.memory_space<vmem>>, vector<1x256xf32>
    %24 = vector.broadcast %23 : vector<1x256xf32> to vector<8x256xf32>
    %25 = arith.addf %22, %24 : vector<8x256xf32>
    %cst_20 = arith.constant 0.000000e+00 : f32
    %26 = vector.broadcast %cst_20 : f32 to vector<8x256xf32>
    %27 = arith.maximumf %25, %26 : vector<8x256xf32>
    %28 = arith.truncf %27 : vector<8x256xf32> to vector<8x256xbf16>
    %c0_21 = arith.constant 0 : index
    %c0_22 = arith.constant 0 : index
    %29 = vector.load %arg9[%c0_21, %c0_22] : memref<256x784xbf16, #tpu.memory_space<vmem>>, vector<256x784xbf16>
    %cst_23 = arith.constant dense<0.000000e+00> : vector<8x784xf32>
    %30 = tpu.matmul %28, %29, %cst_23 {dimension_numbers = #tpu.dot_dimension_numbers<[1], [0], [0], [1], [0, 0, 1, 1], [], []>} : vector<8x256xbf16>, vector<256x784xbf16>, vector<8x784xf32> -> vector<8x784xf32>
    %c0_24 = arith.constant 0 : index
    %c0_25 = arith.constant 0 : index
    %31 = vector.load %arg10[%c0_24, %c0_25] : memref<1x784xf32, #tpu.memory_space<vmem>>, vector<1x784xf32>
    %32 = vector.broadcast %31 : vector<1x784xf32> to vector<8x784xf32>
    %33 = arith.addf %30, %32 : vector<8x784xf32>
    %34 = arith.negf %33 : vector<8x784xf32>
    %35 = math.exp %34 : vector<8x784xf32>
    %cst_26 = arith.constant 1.000000e+00 : f32
    %36 = vector.broadcast %cst_26 : f32 to vector<8x784xf32>
    %37 = arith.addf %36, %35 : vector<8x784xf32>
    %38 = arith.divf %36, %37 : vector<8x784xf32>
    %c0_27 = arith.constant 0 : index
    %c0_28 = arith.constant 0 : index
    %39 = vector.load %arg11[%c0_27, %c0_28] : memref<8x784xf32, #tpu.memory_space<vmem>>, vector<8x784xf32>
    tpu.vector_store %arg11[%c0_27, %c0_28], %38 {strides = array<i32>} : memref<8x784xf32, #tpu.memory_space<vmem>>, vector<8x784xf32>,
    return
  }
  func.func @transform_0(%arg0: i32) -> (i32, i32) {
    %c0_i32 = arith.constant 0 : i32
    %c0_i32_0 = arith.constant 0 : i32
    return %arg0, %c0_i32 : i32, i32
  }
  func.func @transform_1(%arg0: i32) -> (i32, i32) {
    %c0_i32 = arith.constant 0 : i32
    %c0_i32_0 = arith.constant 0 : i32
    %c0_i32_1 = arith.constant 0 : i32
    return %c0_i32, %c0_i32_0 : i32, i32
  }
  func.func @transform_2(%arg0: i32) -> (i32, i32) {
    %c0_i32 = arith.constant 0 : i32
    %c0_i32_0 = arith.constant 0 : i32
    %c0_i32_1 = arith.constant 0 : i32
    return %c0_i32, %c0_i32_0 : i32, i32
  }
  func.func @transform_3(%arg0: i32) -> (i32, i32) {
    %c0_i32 = arith.constant 0 : i32
    %c0_i32_0 = arith.constant 0 : i32
    %c0_i32_1 = arith.constant 0 : i32
    return %c0_i32, %c0_i32_0 : i32, i32
  }
  func.func @transform_4(%arg0: i32) -> (i32, i32) {
    %c0_i32 = arith.constant 0 : i32
    %c0_i32_0 = arith.constant 0 : i32
    %c0_i32_1 = arith.constant 0 : i32
    return %c0_i32, %c0_i32_0 : i32, i32
  }
  func.func @transform_5(%arg0: i32) -> (i32, i32) {
    %c0_i32 = arith.constant 0 : i32
    %c0_i32_0 = arith.constant 0 : i32
    return %arg0, %c0_i32 : i32, i32
  }
  func.func @transform_6(%arg0: i32) -> (i32, i32) {
    %c0_i32 = arith.constant 0 : i32
    %c0_i32_0 = arith.constant 0 : i32
    %c0_i32_1 = arith.constant 0 : i32
    return %c0_i32, %c0_i32_0 : i32, i32
  }
  func.func @transform_7(%arg0: i32) -> (i32, i32) {
    %c0_i32 = arith.constant 0 : i32
    %c0_i32_0 = arith.constant 0 : i32
    %c0_i32_1 = arith.constant 0 : i32
    return %c0_i32, %c0_i32_0 : i32, i32
  }
  func.func @transform_8(%arg0: i32) -> (i32, i32) {
    %c0_i32 = arith.constant 0 : i32
    %c0_i32_0 = arith.constant 0 : i32
    %c0_i32_1 = arith.constant 0 : i32
    return %c0_i32, %c0_i32_0 : i32, i32
  }
  func.func @transform_9(%arg0: i32) -> (i32, i32) {
    %c0_i32 = arith.constant 0 : i32
    %c0_i32_0 = arith.constant 0 : i32
    %c0_i32_1 = arith.constant 0 : i32
    return %c0_i32, %c0_i32_0 : i32, i32
  }
  func.func @transform_10(%arg0: i32) -> (i32, i32) {
    %c0_i32 = arith.constant 0 : i32
    %c0_i32_0 = arith.constant 0 : i32
    return %arg0, %c0_i32 : i32, i32
  }
  func.func @transform_11(%arg0: i32) -> (i32, i32) {
    %c0_i32 = arith.constant 0 : i32
    %c0_i32_0 = arith.constant 0 : i32
    return %arg0, %c0_i32 : i32, i32
  }
}

</mosaic_0001>

<bundles_post_ra>
// kernel: tpu_custom_call.1
= control target key start
LH: loop header
LB: loop body
LE: loop exit
PB: predicated region body
PF: predicated region fallthrough
CT: control target
= control target key end

     0   :  { %17 = vsyncpa [#allocation3], 0  ;;  %s3670_s0 = inlined_call_operand.vmem [shape: bf16[8,784], index: 0, kind: input, shape index: {}]   ;;  %s3671_s1 = inlined_call_operand.vmem [shape: bf16[784,256], index: 1, kind: input, shape index: {}]   ;;  %s3672_s2 = inlined_call_operand.vmem [shape: f32[1,256], index: 2, kind: input, shape index: {}]   ;;  %s3673_s3 = inlined_call_operand.vmem [shape: bf16[256,128], index: 3, kind: input, shape index: {}]   ;;  %s3674_s4 = inlined_call_operand.vmem [shape: f32[1,128], index: 4, kind: input, shape index: {}]   ;;  %s3675_s5 = inlined_call_operand.vmem [shape: f32[8,32], index: 5, kind: input, shape index: {}]   ;;  %s3676_s6 = inlined_call_operand.vmem [shape: bf16[32,256], index: 6, kind: input, shape index: {}]   ;;  %s3677_s7 = inlined_call_operand.vmem [shape: f32[1,256], index: 7, kind: input, shape index: {}]   ;;  %s3678_s8 = inlined_call_operand.vmem [shape: bf16[256,784], index: 8, kind: input, shape index: {}]   ;;  %s3679_s9 = inlined_call_operand.vmem [shape: f32[1,784], index: 9, kind: input, shape index: {}]   ;;  %s3680_s10 = inlined_call_operand.hbm [shape: f32[8,784], index: 10, kind: output, shape index: {0}]   ;;  %s3681_s11 = inlined_call_operand.hbm [shape: f32[8,128], index: 11, kind: output, shape index: {1}]  }
   0x1   :  { %v2399_v0 = vld [vmem:[%s3671_s1 + $0x4] ss:$8 sps:$4 sm:$0xff]   ;;  %v2401_v1 = vld [vmem:[%s3671_s1] ss:$8 sps:$4 sm:$0xff]   ;;  %v2402_v2 = vld [vmem:[%s3671_s1 + $0x14] ss:$8 sps:$4 sm:$0xff]  }
   0x2   :  { %672 = vmatprep.subr.bf16.mxu0 %v2399_v0  ;;  %v2404_v3 = vld [vmem:[%s3671_s1 + $0x10] ss:$8 sps:$4 sm:$0xff]   ;;  %v2405_v4 = vld [vmem:[%s3671_s1 + $0x24] ss:$8 sps:$4 sm:$0xff]   ;;  %v2407_v5 = vld [vmem:[%s3671_s1 + $0x20] ss:$8 sps:$4 sm:$0xff]  }
   0x3   :  { %673 = vmatpush1.bf16.msra.mxu0 %v2401_v1  ;;  %v2408_v6 = vld [vmem:[%s3671_s1 + $0x34] ss:$8 sps:$4 sm:$0xff]   ;;  %v2410_v7 = vld [vmem:[%s3671_s1 + $0x30] ss:$8 sps:$4 sm:$0xff]   ;;  %v2411_v8 = vld [vmem:[%s3671_s1 + $0x44] ss:$8 sps:$4 sm:$0xff]  }
   0x4   :  { %674 = vmatprep.subr.bf16.mxu0 %v2402_v2  ;;  %v2413_v9 = vld [vmem:[%s3671_s1 + $0x40] ss:$8 sps:$4 sm:$0xff]   ;;  %v2414_v10 = vld [vmem:[%s3671_s1 + $0x54] ss:$8 sps:$4 sm:$0xff]   ;;  %v2416_v11 = vld [vmem:[%s3671_s1 + $0x50] ss:$8 sps:$4 sm:$0xff]  }
   0x5   :  { %v2417_v12 = vld [vmem:[%s3671_s1 + $0x64] ss:$8 sps:$4 sm:$0xff]   ;;  %v2419_v15 = vld [vmem:[%s3671_s1 + $0x60] ss:$8 sps:$4 sm:$0xff]   ;;  %v2420_v16 = vld [vmem:[%s3671_s1 + $0x74] ss:$8 sps:$4 sm:$0xff]  }
   0x6   :  { %v40_v13 = vld [vmem:[%s3670_s0] sm:$0xff]  ;;  %v2422_v17 = vld [vmem:[%s3671_s1 + $0x70] ss:$8 sps:$4 sm:$0xff]   ;;  %v2426_v20 = vld [vmem:[%s3671_s1 + $0x94] ss:$8 sps:$4 sm:$0xff]  }
   0x7   :  { %675 = vmatpush1.bf16.msra.mxu0 %v2404_v3  ;;  %v2091_v14 = vcombine.high %v40_v13, %v40_v13  ;;  %v2423_v18 = vld [vmem:[%s3671_s1 + $0x84] ss:$8 sps:$4 sm:$0xff]   ;;  %v2425_v19 = vld [vmem:[%s3671_s1 + $0x80] ss:$8 sps:$4 sm:$0xff]   ;;  %v2428_v21 = vld [vmem:[%s3671_s1 + $0x90] ss:$8 sps:$4 sm:$0xff]   ;;  %v2090_v36 = vcombine.low %v40_v13, %v40_v13 }
   0x8   :  { %676 = vmatprep.subr.bf16.mxu0 %v2405_v4  ;;  %v2429_v22 = vld [vmem:[%s3671_s1 + $0xa4] ss:$8 sps:$4 sm:$0xff]   ;;  %v2431_v23 = vld [vmem:[%s3671_s1 + $0xa0] ss:$8 sps:$4 sm:$0xff]   ;;  %v2432_v24 = vld [vmem:[%s3671_s1 + $0xb4] ss:$8 sps:$4 sm:$0xff]  }
   0x9   :  { %704 = vmatprep.mubr.bf16.mxu0 %v2091_v14  ;;  %v2434_v25 = vld [vmem:[%s3671_s1 + $0xb0] ss:$8 sps:$4 sm:$0xff]   ;;  %v2435_v26 = vld [vmem:[%s3671_s1 + $0xc4] ss:$8 sps:$4 sm:$0xff]   ;;  %v2437_v27 = vld [vmem:[%s3671_s1 + $0xc0] ss:$8 sps:$4 sm:$0xff]  }
   0xa   :  { %v2438_v28 = vld [vmem:[%s3671_s1 + $0xd4] ss:$8 sps:$4 sm:$0xff]   ;;  %v2440_v29 = vld [vmem:[%s3671_s1 + $0xd0] ss:$8 sps:$4 sm:$0xff]   ;;  %v2441_v30 = vld [vmem:[%s3671_s1 + $0xe4] ss:$8 sps:$4 sm:$0xff]  }
   0xb   :  { %677 = vmatpush1.bf16.msra.mxu0 %v2407_v5  ;;  %v2443_v31 = vld [vmem:[%s3671_s1 + $0xe0] ss:$8 sps:$4 sm:$0xff]   ;;  %v2444_v32 = vld [vmem:[%s3671_s1 + $0xf4] ss:$8 sps:$4 sm:$0xff]   ;;  %v2446_v33 = vld [vmem:[%s3671_s1 + $0xf0] ss:$8 sps:$4 sm:$0xff]  }
   0xc   :  { %678 = vmatprep.subr.bf16.mxu0 %v2408_v6  ;;  %v2451_v34 = vld [vmem:[%s3671_s1 + $0x104] ss:$8 sps:$4 sm:$0xff]   ;;  %v2449_v37 = vld [vmem:[%s3671_s1 + $0x100] ss:$8 sps:$4 sm:$0xff]   ;;  %v2454_v39 = vld [vmem:[%s3671_s1 + $0x114] ss:$8 sps:$4 sm:$0xff]  }
   0xd   :  { %v2980_v35 = vld [vmem:[%s3670_s0 + $0x8] sm:$0xff]  ;;  %v2452_v40 = vld [vmem:[%s3671_s1 + $0x110] ss:$8 sps:$4 sm:$0xff]   ;;  %v2460_v43 = vld [vmem:[%s3671_s1 + $0x134] ss:$8 sps:$4 sm:$0xff]  }
   0xe   :  { %v2093_v38 = vcombine.high %v2980_v35, %v2980_v35  ;;  %v2457_v41 = vld [vmem:[%s3671_s1 + $0x124] ss:$8 sps:$4 sm:$0xff]   ;;  %v2455_v42 = vld [vmem:[%s3671_s1 + $0x120] ss:$8 sps:$4 sm:$0xff]   ;;  %v2458_v44 = vld [vmem:[%s3671_s1 + $0x130] ss:$8 sps:$4 sm:$0xff]  }
   0xf   :  { %679 = vmatpush1.bf16.msra.mxu0 %v2410_v7  ;;  %v2463_v45 = vld [vmem:[%s3671_s1 + $0x144] ss:$8 sps:$4 sm:$0xff]   ;;  %v2461_v49 = vld [vmem:[%s3671_s1 + $0x140] ss:$8 sps:$4 sm:$0xff]   ;;  %v2466_v50 = vld [vmem:[%s3671_s1 + $0x154] ss:$8 sps:$4 sm:$0xff]  }
  0x10   :  { %680 = vmatprep.subr.bf16.mxu0 %v2411_v8  ;;  %v2553_v46 = vld [vmem:[%s3673_s3 + $0x40] sm:$0xff]   ;;  %v2555_v48 = vld [vmem:[%s3673_s3 + $0x48] sm:$0xff]   ;;  %v2464_v51 = vld [vmem:[%s3671_s1 + $0x150] ss:$8 sps:$4 sm:$0xff]  }
  0x11   :  { %v2554_v47 = vld [vmem:[%s3673_s3] sm:$0xff]   ;;  %2337 = vmatprep.subr.bf16.mxu1 %v2553_v46  ;;  %v2556_v52 = vld [vmem:[%s3673_s3 + $0x8] sm:$0xff]   ;;  %v2557_v54 = vld [vmem:[%s3673_s3 + $0x50] sm:$0xff]  }
  0x12   :  { %2338 = vmatpush3.bf16.msra.mxu1 %v2554_v47  ;;  %v2469_v53 = vld [vmem:[%s3671_s1 + $0x164] ss:$8 sps:$4 sm:$0xff]   ;;  %v2558_v55 = vld [vmem:[%s3673_s3 + $0x10] sm:$0xff]   ;;  %v2559_v56 = vld [vmem:[%s3673_s3 + $0x58] sm:$0xff]  }
  0x13   :  { %681 = vmatpush1.bf16.msra.mxu0 %v2413_v9  ;;  %2339 = vmatprep.subr.bf16.mxu1 %v2555_v48  ;;  %v2467_v57 = vld [vmem:[%s3671_s1 + $0x160] ss:$8 sps:$4 sm:$0xff]   ;;  %v2472_v58 = vld [vmem:[%s3671_s1 + $0x174] ss:$8 sps:$4 sm:$0xff]   ;;  %v2470_v61 = vld [vmem:[%s3671_s1 + $0x170] ss:$8 sps:$4 sm:$0xff]  }
  0x14   :  { %682 = vmatprep.subr.bf16.mxu0 %v2414_v10  ;;  %v2560_v59 = vld [vmem:[%s3673_s3 + $0x18] sm:$0xff]   ;;  %v2561_v60 = vld [vmem:[%s3673_s3 + $0x60] sm:$0xff]   ;;  %v2563_v0 = vld [vmem:[%s3673_s3 + $0x68] sm:$0xff]  }
  0x15   :  { %v2475_v62 = vld [vmem:[%s3671_s1 + $0x184] ss:$8 sps:$4 sm:$0xff]   ;;  %v2473_v1 = vld [vmem:[%s3671_s1 + $0x180] ss:$8 sps:$4 sm:$0xff]   ;;  %v2478_v2 = vld [vmem:[%s3671_s1 + $0x194] ss:$8 sps:$4 sm:$0xff]  }
  0x16   :  { %2340 = vmatpush3.bf16.msra.mxu1 %v2556_v52  ;;  %v2562_v63 = vld [vmem:[%s3673_s3 + $0x20] sm:$0xff]   ;;  %v2564_v3 = vld [vmem:[%s3673_s3 + $0x28] sm:$0xff]   ;;  %v2476_v4 = vld [vmem:[%s3671_s1 + $0x190] ss:$8 sps:$4 sm:$0xff]  }
  0x17   :  { %683 = vmatpush1.bf16.msra.mxu0 %v2416_v11  ;;  %2341 = vmatprep.subr.bf16.mxu1 %v2557_v54  ;;  %v2481_v5 = vld [vmem:[%s3671_s1 + $0x1a4] ss:$8 sps:$4 sm:$0xff]   ;;  %v2479_v6 = vld [vmem:[%s3671_s1 + $0x1a0] ss:$8 sps:$4 sm:$0xff]   ;;  %v2484_v7 = vld [vmem:[%s3671_s1 + $0x1b4] ss:$8 sps:$4 sm:$0xff]  }
  0x18   :  { %684 = vmatprep.subr.bf16.mxu0 %v2417_v12  ;;  %v2482_v8 = vld [vmem:[%s3671_s1 + $0x1b0] ss:$8 sps:$4 sm:$0xff]   ;;  %v2487_v9 = vld [vmem:[%s3671_s1 + $0x1c4] ss:$8 sps:$4 sm:$0xff]   ;;  %v2485_v10 = vld [vmem:[%s3671_s1 + $0x1c0] ss:$8 sps:$4 sm:$0xff]  }
  0x19   :  { %v2490_v11 = vld [vmem:[%s3671_s1 + $0x1d4] ss:$8 sps:$4 sm:$0xff]   ;;  %v2488_v12 = vld [vmem:[%s3671_s1 + $0x1d0] ss:$8 sps:$4 sm:$0xff]   ;;  %v2493_v13 = vld [vmem:[%s3671_s1 + $0x1e4] ss:$8 sps:$4 sm:$0xff]  }
  0x1a   :  { %2342 = vmatpush3.bf16.msra.mxu1 %v2558_v55  ;;  %v2491_v14 = vld [vmem:[%s3671_s1 + $0x1e0] ss:$8 sps:$4 sm:$0xff]  }
  0x1b   :  { %685 = vmatpush1.bf16.msra.mxu0 %v2419_v15  ;;  %2343 = vmatprep.subr.bf16.mxu1 %v2559_v56  ;;  %v2496_v15 = vld [vmem:[%s3671_s1 + $0x1f4] ss:$8 sps:$4 sm:$0xff]  }
  0x1c   :  { %686 = vmatprep.subr.bf16.mxu0 %v2420_v16  ;;  %v2494_v16 = vld [vmem:[%s3671_s1 + $0x1f0] ss:$8 sps:$4 sm:$0xff]  }
  0x1e   :  { %2344 = vmatpush3.bf16.msra.mxu1 %v2560_v59 }
  0x1f   :  { %687 = vmatpush1.bf16.msra.mxu0 %v2422_v17  ;;  %2345 = vmatprep.subr.bf16.mxu1 %v2561_v60  ;;  %v2501_v17 = vld [vmem:[%s3671_s1 + $0x204] ss:$8 sps:$4 sm:$0xff]  }
  0x20   :  { %688 = vmatprep.subr.bf16.mxu0 %v2423_v18  ;;  %v3119_v18 = vld [vmem:[%s3670_s0 + $0x10] sm:$0xff] }
  0x22   :  { %2346 = vmatpush3.bf16.msra.mxu1 %v2562_v63 }
  0x23   :  { %689 = vmatpush1.bf16.msra.mxu0 %v2425_v19  ;;  %2347 = vmatprep.subr.bf16.mxu1 %v2563_v0  ;;  %v2092_v19 = vcombine.low %v2980_v35, %v2980_v35 }
  0x24   :  { %690 = vmatprep.subr.bf16.mxu0 %v2426_v20 }
  0x26   :  { %2348 = vmatpush3.bf16.msra.mxu1 %v2564_v3 }
  0x27   :  { %691 = vmatpush1.bf16.msra.mxu0 %v2428_v21 }
  0x28   :  { %692 = vmatprep.subr.bf16.mxu0 %v2429_v22 }
  0x2b   :  { %693 = vmatpush1.bf16.msra.mxu0 %v2431_v23 }
  0x2c   :  { %694 = vmatprep.subr.bf16.mxu0 %v2432_v24 }
  0x2f   :  { %695 = vmatpush1.bf16.msra.mxu0 %v2434_v25 }
  0x30   :  { %696 = vmatprep.subr.bf16.mxu0 %v2435_v26 }
  0x33   :  { %697 = vmatpush1.bf16.msra.mxu0 %v2437_v27 }
  0x34   :  { %698 = vmatprep.subr.bf16.mxu0 %v2438_v28 }
  0x37   :  { %699 = vmatpush1.bf16.msra.mxu0 %v2440_v29 }
  0x38   :  { %700 = vmatprep.subr.bf16.mxu0 %v2441_v30 }
  0x3b   :  { %701 = vmatpush1.bf16.msra.mxu0 %v2443_v31 }
  0x3c   :  { %702 = vmatprep.subr.bf16.mxu0 %v2444_v32 }
  0x3f   :  { %703 = vmatpush1.bf16.msra.mxu0 %v2446_v33 }
  0x40   :  { %713 = vmatprep.subr.bf16.mxu0 %v2451_v34 }
  0x42   :  { %705 = vmatmul.mubr.bf16.vlgmr.msra.gmra.mrb[0].mxu0 %v2090_v36 }
  0x43   :  { %714 = vmatpush1.bf16.msra.mxu0 %v2449_v37  ;;  %745 = vmatprep.mubr.bf16.mxu0 %v2093_v38 }
  0x44   :  { %715 = vmatprep.subr.bf16.mxu0 %v2454_v39 }
  0x47   :  { %716 = vmatpush1.bf16.msra.mxu0 %v2452_v40 }
  0x48   :  { %717 = vmatprep.subr.bf16.mxu0 %v2457_v41 }
  0x4b   :  { %718 = vmatpush1.bf16.msra.mxu0 %v2455_v42 }
  0x4c   :  { %719 = vmatprep.subr.bf16.mxu0 %v2460_v43 }
  0x4f   :  { %720 = vmatpush1.bf16.msra.mxu0 %v2458_v44 }
  0x50   :  { %721 = vmatprep.subr.bf16.mxu0 %v2463_v45 }
  0x53   :  { %722 = vmatpush1.bf16.msra.mxu0 %v2461_v49 }
  0x54   :  { %723 = vmatprep.subr.bf16.mxu0 %v2466_v50 }
  0x57   :  { %724 = vmatpush1.bf16.msra.mxu0 %v2464_v51 }
  0x58   :  { %725 = vmatprep.subr.bf16.mxu0 %v2469_v53 }
  0x5b   :  { %726 = vmatpush1.bf16.msra.mxu0 %v2467_v57 }
  0x5c   :  { %727 = vmatprep.subr.bf16.mxu0 %v2472_v58 }
  0x5f   :  { %728 = vmatpush1.bf16.msra.mxu0 %v2470_v61 }
  0x60   :  { %729 = vmatprep.subr.bf16.mxu0 %v2475_v62 }
  0x63   :  { %730 = vmatpush1.bf16.msra.mxu0 %v2473_v1 }
  0x64   :  { %731 = vmatprep.subr.bf16.mxu0 %v2478_v2 }
  0x67   :  { %732 = vmatpush1.bf16.msra.mxu0 %v2476_v4 }
  0x68   :  { %733 = vmatprep.subr.bf16.mxu0 %v2481_v5 }
  0x6b   :  { %734 = vmatpush1.bf16.msra.mxu0 %v2479_v6 }
  0x6c   :  { %735 = vmatprep.subr.bf16.mxu0 %v2484_v7 }
  0x6f   :  { %736 = vmatpush1.bf16.msra.mxu0 %v2482_v8 }
  0x70   :  { %737 = vmatprep.subr.bf16.mxu0 %v2487_v9 }
  0x73   :  { %738 = vmatpush1.bf16.msra.mxu0 %v2485_v10 }
  0x74   :  { %739 = vmatprep.subr.bf16.mxu0 %v2490_v11 }
  0x77   :  { %740 = vmatpush1.bf16.msra.mxu0 %v2488_v12 }
  0x78   :  { %741 = vmatprep.subr.bf16.mxu0 %v2493_v13 }
  0x7b   :  { %742 = vmatpush1.bf16.msra.mxu0 %v2491_v14 }
  0x7c   :  { %743 = vmatprep.subr.bf16.mxu0 %v2496_v15 }
  0x7d   :  { %18 = vsyncpa [#allocation5], 0  ;;  %v2499_v20 = vld [vmem:[%s3671_s1 + $0x200] ss:$8 sps:$4 sm:$0xff]   ;;  %v2095_v21 = vcombine.high %v3119_v18, %v3119_v18  ;;  %v2504_v22 = vld [vmem:[%s3671_s1 + $0x214] ss:$8 sps:$4 sm:$0xff]   ;;  %v2094_v53 = vcombine.low %v3119_v18, %v3119_v18  ;;  %v144_v61 = vlaneseq }
  0x7e   :  { %v2502_v23 = vld [vmem:[%s3671_s1 + $0x210] ss:$8 sps:$4 sm:$0xff]   ;;  %v2507_v24 = vld [vmem:[%s3671_s1 + $0x224] ss:$8 sps:$4 sm:$0xff]   ;;  %v2505_v25 = vld [vmem:[%s3671_s1 + $0x220] ss:$8 sps:$4 sm:$0xff]  }
  0x7f   :  { %744 = vmatpush1.bf16.msra.mxu0 %v2494_v16  ;;  %v2510_v26 = vld [vmem:[%s3671_s1 + $0x234] ss:$8 sps:$4 sm:$0xff]   ;;  %v2508_v27 = vld [vmem:[%s3671_s1 + $0x230] ss:$8 sps:$4 sm:$0xff]   ;;  %v2513_v28 = vld [vmem:[%s3671_s1 + $0x244] ss:$8 sps:$4 sm:$0xff]  }
  0x80   :  { %754 = vmatprep.subr.bf16.mxu0 %v2501_v17  ;;  %v2511_v29 = vld [vmem:[%s3671_s1 + $0x240] ss:$8 sps:$4 sm:$0xff]   ;;  %v2516_v30 = vld [vmem:[%s3671_s1 + $0x254] ss:$8 sps:$4 sm:$0xff]   ;;  %v2514_v31 = vld [vmem:[%s3671_s1 + $0x250] ss:$8 sps:$4 sm:$0xff]  }
  0x81   :  { %v2519_v32 = vld [vmem:[%s3671_s1 + $0x264] ss:$8 sps:$4 sm:$0xff]   ;;  %v2517_v33 = vld [vmem:[%s3671_s1 + $0x260] ss:$8 sps:$4 sm:$0xff]   ;;  %v2522_v34 = vld [vmem:[%s3671_s1 + $0x274] ss:$8 sps:$4 sm:$0xff]  }
  0x82   :  { %746 = vmatmul.mubr.bf16.vlgmr.msra.gmra.mrb[0].mxu0 %v2092_v19  ;;  %v2520_v35 = vld [vmem:[%s3671_s1 + $0x270] ss:$8 sps:$4 sm:$0xff]   ;;  %v2525_v36 = vld [vmem:[%s3671_s1 + $0x284] ss:$8 sps:$4 sm:$0xff]   ;;  %v2523_v37 = vld [vmem:[%s3671_s1 + $0x280] ss:$8 sps:$4 sm:$0xff]  }
  0x83   :  { %755 = vmatpush1.bf16.msra.mxu0 %v2499_v20  ;;  %786 = vmatprep.mubr.bf16.mxu0 %v2095_v21  ;;  %v2528_v38 = vld [vmem:[%s3671_s1 + $0x294] ss:$8 sps:$4 sm:$0xff]   ;;  %v2526_v39 = vld [vmem:[%s3671_s1 + $0x290] ss:$8 sps:$4 sm:$0xff]   ;;  %v2531_v40 = vld [vmem:[%s3671_s1 + $0x2a4] ss:$8 sps:$4 sm:$0xff]  }
  0x84   :  { %756 = vmatprep.subr.bf16.mxu0 %v2504_v22  ;;  %v2529_v41 = vld [vmem:[%s3671_s1 + $0x2a0] ss:$8 sps:$4 sm:$0xff]   ;;  %v2534_v42 = vld [vmem:[%s3671_s1 + $0x2b4] ss:$8 sps:$4 sm:$0xff]   ;;  %v2532_v43 = vld [vmem:[%s3671_s1 + $0x2b0] ss:$8 sps:$4 sm:$0xff]  }
  0x85   :  { %v2537_v44 = vld [vmem:[%s3671_s1 + $0x2c4] ss:$8 sps:$4 sm:$0xff]   ;;  %v2535_v45 = vld [vmem:[%s3671_s1 + $0x2c0] ss:$8 sps:$4 sm:$0xff]   ;;  %v2540_v46 = vld [vmem:[%s3671_s1 + $0x2d4] ss:$8 sps:$4 sm:$0xff]  }
  0x86   :  { %v2538_v47 = vld [vmem:[%s3671_s1 + $0x2d0] ss:$8 sps:$4 sm:$0xff]   ;;  %v2543_v48 = vld [vmem:[%s3671_s1 + $0x2e4] ss:$8 sps:$4 sm:$0xff]   ;;  %v2541_v49 = vld [vmem:[%s3671_s1 + $0x2e0] ss:$8 sps:$4 sm:$0xff]  }
  0x87   :  { %757 = vmatpush1.bf16.msra.mxu0 %v2502_v23  ;;  %v2546_v50 = vld [vmem:[%s3671_s1 + $0x2f4] ss:$8 sps:$4 sm:$0xff]   ;;  %v2544_v51 = vld [vmem:[%s3671_s1 + $0x2f0] ss:$8 sps:$4 sm:$0xff]   ;;  %v2551_v52 = vld [vmem:[%s3671_s1 + $0x304] ss:$8 sps:$4 sm:$0xff]  }
  0x88   :  { %758 = vmatprep.subr.bf16.mxu0 %v2507_v24  ;;  %v2549_v54 = vld [vmem:[%s3671_s1 + $0x300] ss:$8 sps:$4 sm:$0xff]   ;;  %v2811_v55 = vmov 0   ;;  %v2552_v56 = vld [vmem:[%s3670_s0 + $0x18] ss:$0 sps:$4 sm:$0xff]   ;;  %vm668_vm0 = vcmask 130048  }
  0x89   :  { %v2565_v57 = vld [vmem:[%s3673_s3 + $0x70] sm:$0xff]   ;;  %v2567_v59 = vld [vmem:[%s3673_s3 + $0x78] sm:$0xff]   ;;  %v3242_v62 = vshrl.u32 %v144_v61, 7  ;;  %v142_v0 = vld [vmem:[%s3672_s2] sm:$0x3]  ;;  %s2812_s16 = smov 96  }
  0x8a   :  { %v2566_v58 = vld [vmem:[%s3673_s3 + $0x30] sm:$0xff]   ;;  %2349 = vmatprep.subr.bf16.mxu1 %v2565_v57  ;;  %v2568_v60 = vld [vmem:[%s3673_s3 + $0x38] sm:$0xff]   ;;  %v2569_v14 = vld [vmem:[%s3676_s6] ss:$8 sps:$4 sm:$0xff]   ;;  %vm1060_vm1 = vcmask 261120  }
  0x8b   :  { %759 = vmatpush1.bf16.msra.mxu0 %v2505_v25  ;;  %2350 = vmatpush3.bf16.msra.mxu1 %v2566_v58  ;;  %v3245_v63 = vsub.s32 0, %v3242_v62  ;;  %v3251_v1 = vsub.s32 1, %v3242_v62  ;;  %v2571_v15 = vld [vmem:[%s3676_s6 + $0x4] ss:$8 sps:$4 sm:$0xff]   ;;  %v2574_v16 = vld [vmem:[%s3676_s6 + $0x14] ss:$8 sps:$4 sm:$0xff]  }
  0x8c   :  { %760 = vmatprep.subr.bf16.mxu0 %v2510_v26  ;;  %2351 = vmatprep.subr.bf16.mxu1 %v2567_v59  ;;  %v2572_v17 = vld [vmem:[%s3676_s6 + $0x10] ss:$8 sps:$4 sm:$0xff]   ;;  %v2577_v18 = vld [vmem:[%s3678_s8 + $0x4] ss:$28 sps:$4 sm:$0xff]  }
  0x8d   :  { %v147_v2 = vrot.slane %v142_v0, %v3245_v63  ;;  %v151_v3 = vrot.slane %v142_v0, %v3251_v1  ;;  %v2196_v20 = vld [vmem:[%s3674_s4] ss:$0 sm:$0xff]  ;;  %v2602_v26 = vld [vmem:[%s3678_s8 + $0x1d8] ss:$28 sps:$4 sm:$0xff]   ;;  %v2596_v57 = vld [vmem:[%s3678_s8 + $0x188] ss:$28 sps:$4 sm:$0xff]  }
  0x8e   :  { %v2601_v58 = vld [vmem:[%s3678_s8 + $0x1c4] ss:$28 sps:$4 sm:$0xff]   ;;  %v2604_v61 = vld [vmem:[%s3678_s8 + $0x1f8] ss:$28 sps:$4 sm:$0xff]  }
  0x8f   :  { %761 = vmatpush1.bf16.msra.mxu0 %v2508_v27  ;;  %2352 = vmatpush3.bf16.msra.mxu1 %v2568_v60  ;;  %v2603_v27 = vld [vmem:[%s3678_s8 + $0x18] ss:$28 sps:$4 sm:$0xff]   ;;  %v2599_v59 = vld [vmem:[%s3678_s8 + $0x1c0] ss:$28 sps:$4 sm:$0xff]  }
  0x90   :  { %762 = vmatprep.subr.bf16.mxu0 %v2513_v28  ;;  %1064 = vmatprep.subr.bf16.mxu1 %v2571_v15  ;;  %v2607_v28 = vld [vmem:[%s3678_s8 + $0x210] ss:$28 sps:$4 sm:$0xff]   ;;  %v2606_v60 = vld [vmem:[%s3678_s8 + $0x1fc] ss:$28 sps:$4 sm:$0xff]  }
  0x91   :  { %v2611_v0 = vld [vmem:[%s3678_s8 + $0x234] ss:$28 sps:$4 sm:$0xff]   ;;  %v2637_v15 = vld [vmem:[%s3678_s8 + $0x360] ss:$28 sps:$4 sm:$0xff]  }
  0x93   :  { %763 = vmatpush1.bf16.msra.mxu0 %v2511_v29  ;;  %v2608_v29 = vld [vmem:[%s3678_s8 + $0x50] ss:$28 sps:$4 sm:$0xff]  }
  0x94   :  { %764 = vmatprep.subr.bf16.mxu0 %v2516_v30  ;;  %v2612_v30 = vld [vmem:[%s3678_s8 + $0x248] ss:$28 sps:$4 sm:$0xff]  }
  0x97   :  { %765 = vmatpush1.bf16.msra.mxu0 %v2514_v31  ;;  %v2613_v31 = vld [vmem:[%s3678_s8 + $0x88] ss:$28 sps:$4 sm:$0xff]  }
  0x98   :  { %766 = vmatprep.subr.bf16.mxu0 %v2519_v32  ;;  %v2617_v32 = vld [vmem:[%s3678_s8 + $0x280] ss:$28 sps:$4 sm:$0xff]  }
  0x9b   :  { %767 = vmatpush1.bf16.msra.mxu0 %v2517_v33  ;;  %v2618_v33 = vld [vmem:[%s3678_s8 + $0xc0] ss:$28 sps:$4 sm:$0xff]  }
  0x9c   :  { %768 = vmatprep.subr.bf16.mxu0 %v2522_v34  ;;  %v2622_v34 = vld [vmem:[%s3678_s8 + $0x2b8] ss:$28 sps:$4 sm:$0xff]  }
  0x9f   :  { %769 = vmatpush1.bf16.msra.mxu0 %v2520_v35  ;;  %v2623_v35 = vld [vmem:[%s3678_s8 + $0xf8] ss:$28 sps:$4 sm:$0xff]  }
  0xa0   :  { %770 = vmatprep.subr.bf16.mxu0 %v2525_v36  ;;  %v2627_v36 = vld [vmem:[%s3678_s8 + $0x2f0] ss:$28 sps:$4 sm:$0xff]  }
  0xa3   :  { %771 = vmatpush1.bf16.msra.mxu0 %v2523_v37  ;;  %v2628_v37 = vld [vmem:[%s3678_s8 + $0x130] ss:$28 sps:$4 sm:$0xff]  }
  0xa4   :  { %772 = vmatprep.subr.bf16.mxu0 %v2528_v38  ;;  %v1016_v38 = vld [vmem:[%s3675_s5] sm:$0xff] }
  0xa7   :  { %773 = vmatpush1.bf16.msra.mxu0 %v2526_v39 }
  0xa8   :  { %774 = vmatprep.subr.bf16.mxu0 %v2531_v40 }
  0xab   :  { %775 = vmatpush1.bf16.msra.mxu0 %v2529_v41 }
  0xac   :  { %776 = vmatprep.subr.bf16.mxu0 %v2534_v42  ;;  %v2575_v42 = vld [vmem:[%s3678_s8] ss:$28 sps:$4 sm:$0xff]  }
  0xaf   :  { %777 = vmatpush1.bf16.msra.mxu0 %v2532_v43 }
  0xb0   :  { %778 = vmatprep.subr.bf16.mxu0 %v2537_v44  ;;  %v2580_v44 = vld [vmem:[%s3678_s8 + $0x3c] ss:$28 sps:$4 sm:$0xff]  }
  0xb3   :  { %779 = vmatpush1.bf16.msra.mxu0 %v2535_v45  ;;  %v2578_v45 = vld [vmem:[%s3678_s8 + $0x38] ss:$28 sps:$4 sm:$0xff]  }
  0xb4   :  { %780 = vmatprep.subr.bf16.mxu0 %v2540_v46  ;;  %v2583_v46 = vld [vmem:[%s3678_s8 + $0x74] ss:$28 sps:$4 sm:$0xff]  }
  0xb7   :  { %781 = vmatpush1.bf16.msra.mxu0 %v2538_v47  ;;  %v2581_v47 = vld [vmem:[%s3678_s8 + $0x70] ss:$28 sps:$4 sm:$0xff]  }
  0xb8   :  { %782 = vmatprep.subr.bf16.mxu0 %v2543_v48  ;;  %v2586_v48 = vld [vmem:[%s3678_s8 + $0xac] ss:$28 sps:$4 sm:$0xff]  }
  0xbb   :  { %783 = vmatpush1.bf16.msra.mxu0 %v2541_v49  ;;  %v2584_v49 = vld [vmem:[%s3678_s8 + $0xa8] ss:$28 sps:$4 sm:$0xff]  }
  0xbc   :  { %784 = vmatprep.subr.bf16.mxu0 %v2546_v50  ;;  %v2589_v50 = vld [vmem:[%s3678_s8 + $0xe4] ss:$28 sps:$4 sm:$0xff]  }
  0xbf   :  { %785 = vmatpush1.bf16.msra.mxu0 %v2544_v51  ;;  %v2587_v51 = vld [vmem:[%s3678_s8 + $0xe0] ss:$28 sps:$4 sm:$0xff]  }
  0xc0   :  { %795 = vmatprep.subr.bf16.mxu0 %v2551_v52  ;;  %v2592_v52 = vld [vmem:[%s3678_s8 + $0x11c] ss:$28 sps:$4 sm:$0xff]  }
  0xc2   :  { %787 = vmatmul.mubr.bf16.vlgmr.msra.gmra.mrb[0].mxu0 %v2094_v53  ;;  %v2590_v53 = vld [vmem:[%s3678_s8 + $0x118] ss:$28 sps:$4 sm:$0xff]  }
  0xc3   :  { %796 = vmatpush1.bf16.msra.mxu0 %v2549_v54  ;;  %827 = vmatprep.mubr.bf16.mxu0 %v2811_v55  ;;  %v2595_v54 = vld [vmem:[%s3678_s8 + $0x154] ss:$28 sps:$4 sm:$0xff]  }
  0xc4   :  { %2359 = vmatprep.subr.bf16.mxu0 %v2602_v26 }
  0xce   :  { %2195 = vmatmul.mubr.msk.bf16.vlgmr.msra.gmra.mrb[0].mxu0 %vm668_vm0, %v2552_v56  ;;  %v2598_v56 = vld [vmem:[%s3678_s8 + $0x18c] ss:$28 sps:$4 sm:$0xff]  }
  0xcf   :  { %2360 = vmatpush3.bf16.msra.mxu0 %v2603_v27 }
  0xd0   :  { %2361 = vmatprep.subr.bf16.mxu0 %v2607_v28 }
  0xd3   :  { %2362 = vmatpush3.bf16.msra.mxu0 %v2608_v29 }
  0xd4   :  { %2363 = vmatprep.subr.bf16.mxu0 %v2612_v30  ;;  %v2639_v30 = vld [vmem:[%s3678_s8 + $0x8] ss:$28 sps:$4 sm:$0xff]  }
  0xd7   :  { %2364 = vmatpush3.bf16.msra.mxu0 %v2613_v31 }
  0xd8   :  { %2365 = vmatprep.subr.bf16.mxu0 %v2617_v32  ;;  %v2644_v32 = vld [vmem:[%s3678_s8 + $0x44] ss:$28 sps:$4 sm:$0xff]  }
  0xdb   :  { %2366 = vmatpush3.bf16.msra.mxu0 %v2618_v33  ;;  %v2642_v33 = vld [vmem:[%s3678_s8 + $0x40] ss:$28 sps:$4 sm:$0xff]  }
  0xdc   :  { %2367 = vmatprep.subr.bf16.mxu0 %v2622_v34  ;;  %v2647_v34 = vld [vmem:[%s3678_s8 + $0x7c] ss:$28 sps:$4 sm:$0xff]  }
  0xdf   :  { %2368 = vmatpush3.bf16.msra.mxu0 %v2623_v35  ;;  %v2645_v35 = vld [vmem:[%s3678_s8 + $0x78] ss:$28 sps:$4 sm:$0xff]  }
  0xe0   :  { %2369 = vmatprep.subr.bf16.mxu0 %v2627_v36  ;;  %v2650_v36 = vld [vmem:[%s3678_s8 + $0xb4] ss:$28 sps:$4 sm:$0xff]  }
  0xe3   :  { %2370 = vmatpush3.bf16.msra.mxu0 %v2628_v37  ;;  %v2648_v37 = vld [vmem:[%s3678_s8 + $0xb0] ss:$28 sps:$4 sm:$0xff]  }
 0x1a1   :  { %v829_v4 = vpop.f32.mrb[0].mxu0 }
 0x1a2   :  { %v2381_v5 = vadd.f32 %v829_v4, %v147_v2  ;;  %v831_v6 = vpop.f32.mrb[1].mxu0  ;;  %v2609_v2 = vld [vmem:[%s3678_s8 + $0x230] ss:$28 sps:$4 sm:$0xff]   ;;  %v2614_v4 = vld [vmem:[%s3678_s8 + $0x268] ss:$28 sps:$4 sm:$0xff]  }
 0x1a3   :  { %v2382_v7 = vadd.f32 %v831_v6, %v151_v3  ;;  %v833_v8 = vpop.f32.mrb[2].mxu0  ;;  %v2616_v3 = vld [vmem:[%s3678_s8 + $0x26c] ss:$28 sps:$4 sm:$0xff]   ;;  %v2619_v6 = vld [vmem:[%s3678_s8 + $0x2a0] ss:$28 sps:$4 sm:$0xff]  }
 0x1a4   :  { %v836_v9 = vmax.f32 %v2381_v5, 0.0  ;;  %v834_v10 = vpop.f32.mrb[3].mxu0  ;;  %v2621_v5 = vld [vmem:[%s3678_s8 + $0x2a4] ss:$28 sps:$4 sm:$0xff]   ;;  %v2624_v8 = vld [vmem:[%s3678_s8 + $0x2d8] ss:$28 sps:$4 sm:$0xff]  }
 0x1a5   :  { %v837_v11 = vmax.f32 %v2382_v7, 0.0  ;;  %v2626_v7 = vld [vmem:[%s3678_s8 + $0x2dc] ss:$28 sps:$4 sm:$0xff]   ;;  %v2629_v10 = vld [vmem:[%s3678_s8 + $0x310] ss:$28 sps:$4 sm:$0xff]  }
 0x1a6   :  { %v838_v13 = vpack.c.bf16 %v836_v9, %v836_v9  ;;  %v2631_v9 = vld [vmem:[%s3678_s8 + $0x314] ss:$28 sps:$4 sm:$0xff]  }
 0x1a7   :  { %v839_v12 = vpack.c.bf16 %v837_v11, %v837_v11  ;;  %v2632_v11 = vld [vmem:[%s3678_s8 + $0x328] ss:$28 sps:$4 sm:$0xff]  }
 0x1a8   :  { %2371 = vmatprep.subr.bf16.mxu0 %v2632_v11  ;;  %v2704_v11 = vld [vmem:[%s3678_s8 + $0x12c] ss:$28 sps:$4 sm:$0xff]  }
 0x1a9   :  { %1007 = vmatprep.mubr.bf16.mxu1 %v839_v12  ;;  %v2633_v12 = vld [vmem:[%s3678_s8 + $0x168] ss:$28 sps:$4 sm:$0xff]  }
 0x1aa   :  { %1008 = vmatmul.mubr.bf16.vlgmr.msra.gmra.mrb[0].mxu1 %v838_v13  ;;  %2372 = vmatpush3.bf16.msra.mxu0 %v2633_v12  ;;  %v2636_v13 = vld [vmem:[%s3678_s8 + $0x34c] ss:$28 sps:$4 sm:$0xff]  }
 0x1ab   :  { %1096 = vmatprep.mubr.bf16.mxu1 %v2811_v55  ;;  %1065 = vmatpush1.bf16.msra.mxu1 %v2569_v14  ;;  %v2593_v55 = vld [vmem:[%s3678_s8 + $0x150] ss:$28 sps:$4 sm:$0xff]   ;;  %v2634_v14 = vld [vmem:[%s3678_s8 + $0x348] ss:$28 sps:$4 sm:$0xff]  }
 0x1ac   :  { %1066 = vmatprep.subr.bf16.mxu1 %v2574_v16  ;;  %v2638_v16 = vld [vmem:[%s3678_s8 + $0x1a0] ss:$28 sps:$4 sm:$0xff]   ;;  %2373 = vmatprep.subr.bf16.mxu0 %v2637_v15  ;;  %v2702_v12 = vld [vmem:[%s3678_s8 + $0x128] ss:$28 sps:$4 sm:$0xff]  }
 0x1ad   :  { %v2710_v15 = vld [vmem:[%s3678_s8 + $0x19c] ss:$28 sps:$4 sm:$0xff]  }
 0x1ae   :  { %2374 = vmatpush3.bf16.msra.mxu0 %v2638_v16  ;;  %v2708_v16 = vld [vmem:[%s3678_s8 + $0x198] ss:$28 sps:$4 sm:$0xff]  }
 0x1af   :  { %1067 = vmatpush1.bf16.msra.mxu1 %v2572_v17  ;;  %v2641_v17 = vld [vmem:[%s3678_s8 + $0xc] ss:$28 sps:$4 sm:$0xff]  }
 0x1b0   :  { %1850 = vmatprep.subr.bf16.mxu1 %v2577_v18  ;;  %v1028_v18 = vld [vmem:[%s3677_s7] sm:$0x3] }
 0x27d   :  { %v2353_v19 = vpop.f32.mrb[0].mxu1 }
 0x27e   :  { %v2354_v21 = vpop.f32.mrb[1].mxu1 }
 0x27f   :  { %v2355_v22 = vadd.f32 %v2354_v21, %v2353_v19  ;;  %v2356_v23 = vpop.f32.mrb[2].mxu1  ;;  %v1033_v19 = vrot.slane %v1028_v18, %v3245_v63 }
 0x280   :  { %v2357_v24 = vpop.f32.mrb[3].mxu1 }
 0x281   :  { %v1010_v25 = vadd.f32 %v2355_v22, %v2196_v20  ;;  %v1037_v20 = vrot.slane %v1028_v18, %v3251_v1  ;;  %v2711_v18 = vld [vmem:[%s3678_s8 + $0x1d0] ss:$28 sps:$4 sm:$0xff]  }
 0x283   :  { %1015 = vst [vmem:[#allocation4] sm:$0xff] %v1010_v25  ;;  %1018 = vrot.lane.b32.xlu0 %v1010_v25, %s2812_s16 }
 0x2f5   :  { %v1019_v39 = vpop.permute.xlu0 %1018 }
 0x2f6   :  { %v1021_v40 = vmul.f32 %v1019_v39, %v1016_v38  ;;  %v2653_v38 = vld [vmem:[%s3678_s8 + $0xec] ss:$28 sps:$4 sm:$0xff]  }
 0x2f7   :  { %v2651_v39 = vld [vmem:[%s3678_s8 + $0xe8] ss:$28 sps:$4 sm:$0xff]  }
 0x2f8   :  { %v1022_v41 = vadd.f32 %v1021_v40, %v1010_v25  ;;  %v2656_v40 = vld [vmem:[%s3678_s8 + $0x124] ss:$28 sps:$4 sm:$0xff]  }
 0x2fa   :  { %v1023_v43 = vpack.c.bf16 %v1022_v41, %v1022_v41  ;;  %v2654_v41 = vld [vmem:[%s3678_s8 + $0x120] ss:$28 sps:$4 sm:$0xff]  }
 0x2fc   :  { %2217 = vmatmul.mubr.msk.bf16.vlgmr.msra.gmra.mrb[4].mxu1 %vm1060_vm1, %v1023_v43  ;;  %v2657_v43 = vld [vmem:[%s3678_s8 + $0x158] ss:$28 sps:$4 sm:$0xff]  }
 0x2fd   :  { %1851 = vmatpush1.bf16.msra.mxu1 %v2575_v42  ;;  %v2659_v42 = vld [vmem:[%s3678_s8 + $0x15c] ss:$28 sps:$4 sm:$0xff]  }
 0x2fe   :  { %1852 = vmatprep.subr.bf16.mxu1 %v2580_v44  ;;  %v2662_v44 = vld [vmem:[%s3678_s8 + $0x194] ss:$28 sps:$4 sm:$0xff]  }
 0x301   :  { %1853 = vmatpush1.bf16.msra.mxu1 %v2578_v45  ;;  %v2660_v45 = vld [vmem:[%s3678_s8 + $0x190] ss:$28 sps:$4 sm:$0xff]  }
 0x302   :  { %1854 = vmatprep.subr.bf16.mxu1 %v2583_v46  ;;  %v2665_v46 = vld [vmem:[%s3678_s8 + $0x1cc] ss:$28 sps:$4 sm:$0xff]  }
 0x305   :  { %1855 = vmatpush1.bf16.msra.mxu1 %v2581_v47  ;;  %v2663_v47 = vld [vmem:[%s3678_s8 + $0x1c8] ss:$28 sps:$4 sm:$0xff]  }
 0x306   :  { %1856 = vmatprep.subr.bf16.mxu1 %v2586_v48  ;;  %v2668_v48 = vld [vmem:[%s3678_s8 + $0x204] ss:$28 sps:$4 sm:$0xff]  }
 0x309   :  { %1857 = vmatpush1.bf16.msra.mxu1 %v2584_v49  ;;  %v2666_v49 = vld [vmem:[%s3678_s8 + $0x200] ss:$28 sps:$4 sm:$0xff]  }
 0x30a   :  { %1858 = vmatprep.subr.bf16.mxu1 %v2589_v50  ;;  %v2671_v50 = vld [vmem:[%s3678_s8 + $0x23c] ss:$28 sps:$4 sm:$0xff]  }
 0x30d   :  { %1859 = vmatpush1.bf16.msra.mxu1 %v2587_v51  ;;  %v2669_v51 = vld [vmem:[%s3678_s8 + $0x238] ss:$28 sps:$4 sm:$0xff]  }
 0x30e   :  { %1860 = vmatprep.subr.bf16.mxu1 %v2592_v52  ;;  %v2674_v52 = vld [vmem:[%s3678_s8 + $0x274] ss:$28 sps:$4 sm:$0xff]  }
 0x311   :  { %1861 = vmatpush1.bf16.msra.mxu1 %v2590_v53  ;;  %v2672_v53 = vld [vmem:[%s3678_s8 + $0x270] ss:$28 sps:$4 sm:$0xff]  }
 0x312   :  { %1862 = vmatprep.subr.bf16.mxu1 %v2595_v54  ;;  %v2677_v54 = vld [vmem:[%s3678_s8 + $0x2ac] ss:$28 sps:$4 sm:$0xff]  }
 0x315   :  { %1863 = vmatpush1.bf16.msra.mxu1 %v2593_v55  ;;  %v2675_v55 = vld [vmem:[%s3678_s8 + $0x2a8] ss:$28 sps:$4 sm:$0xff]  }
 0x316   :  { %1864 = vmatprep.subr.bf16.mxu1 %v2598_v56  ;;  %v2680_v56 = vld [vmem:[%s3678_s8 + $0x2e4] ss:$28 sps:$4 sm:$0xff]  }
 0x319   :  { %1865 = vmatpush1.bf16.msra.mxu1 %v2596_v57  ;;  %v2678_v57 = vld [vmem:[%s3678_s8 + $0x2e0] ss:$28 sps:$4 sm:$0xff]  }
 0x31a   :  { %1866 = vmatprep.subr.bf16.mxu1 %v2601_v58  ;;  %v2683_v58 = vld [vmem:[%s3678_s8 + $0x31c] ss:$28 sps:$4 sm:$0xff]  }
 0x31d   :  { %1867 = vmatpush1.bf16.msra.mxu1 %v2599_v59  ;;  %v2681_v59 = vld [vmem:[%s3678_s8 + $0x318] ss:$28 sps:$4 sm:$0xff]  }
 0x31e   :  { %1868 = vmatprep.subr.bf16.mxu1 %v2606_v60  ;;  %v2686_v60 = vld [vmem:[%s3678_s8 + $0x354] ss:$28 sps:$4 sm:$0xff]  }
 0x321   :  { %1869 = vmatpush1.bf16.msra.mxu1 %v2604_v61  ;;  %v2684_v61 = vld [vmem:[%s3678_s8 + $0x350] ss:$28 sps:$4 sm:$0xff]  }
 0x322   :  { %1870 = vmatprep.subr.bf16.mxu1 %v2611_v0  ;;  %v2689_v0 = vld [vmem:[%s3678_s8 + $0x14] ss:$28 sps:$4 sm:$0xff]  }
 0x325   :  { %1871 = vmatpush1.bf16.msra.mxu1 %v2609_v2  ;;  %v2687_v2 = vld [vmem:[%s3678_s8 + $0x10] ss:$28 sps:$4 sm:$0xff]  }
 0x326   :  { %1872 = vmatprep.subr.bf16.mxu1 %v2616_v3  ;;  %v2692_v3 = vld [vmem:[%s3678_s8 + $0x4c] ss:$28 sps:$4 sm:$0xff]  }
 0x329   :  { %1873 = vmatpush1.bf16.msra.mxu1 %v2614_v4  ;;  %v2690_v4 = vld [vmem:[%s3678_s8 + $0x48] ss:$28 sps:$4 sm:$0xff]  }
 0x32a   :  { %1874 = vmatprep.subr.bf16.mxu1 %v2621_v5  ;;  %v2695_v5 = vld [vmem:[%s3678_s8 + $0x84] ss:$28 sps:$4 sm:$0xff]  }
 0x32d   :  { %1875 = vmatpush1.bf16.msra.mxu1 %v2619_v6  ;;  %v2693_v6 = vld [vmem:[%s3678_s8 + $0x80] ss:$28 sps:$4 sm:$0xff]  }
 0x32e   :  { %1876 = vmatprep.subr.bf16.mxu1 %v2626_v7  ;;  %v2698_v7 = vld [vmem:[%s3678_s8 + $0xbc] ss:$28 sps:$4 sm:$0xff]  }
 0x331   :  { %1877 = vmatpush1.bf16.msra.mxu1 %v2624_v8  ;;  %v2696_v8 = vld [vmem:[%s3678_s8 + $0xb8] ss:$28 sps:$4 sm:$0xff]  }
 0x332   :  { %1878 = vmatprep.subr.bf16.mxu1 %v2631_v9  ;;  %v2701_v9 = vld [vmem:[%s3678_s8 + $0xf4] ss:$28 sps:$4 sm:$0xff]  }
 0x335   :  { %1879 = vmatpush1.bf16.msra.mxu1 %v2629_v10  ;;  %v2699_v10 = vld [vmem:[%s3678_s8 + $0xf0] ss:$28 sps:$4 sm:$0xff]  }
 0x336   :  { %1880 = vmatprep.subr.bf16.mxu1 %v2636_v13  ;;  %v2707_v13 = vld [vmem:[%s3678_s8 + $0x164] ss:$28 sps:$4 sm:$0xff]  }
 0x339   :  { %1881 = vmatpush1.bf16.msra.mxu1 %v2634_v14  ;;  %v2705_v14 = vld [vmem:[%s3678_s8 + $0x160] ss:$28 sps:$4 sm:$0xff]  }
 0x33a   :  { %1891 = vmatprep.subr.bf16.mxu1 %v2641_v17  ;;  %v2713_v17 = vld [vmem:[%s3678_s8 + $0x1d4] ss:$28 sps:$4 sm:$0xff]  }
 0x3cf   :  { %v1098_v21 = vpop.f32.mrb[4].mxu1 }
 0x3d0   :  { %v1099_v22 = vadd.f32 %v1098_v21, %v1033_v19  ;;  %v1100_v23 = vpop.f32.mrb[5].mxu1  ;;  %v2716_v19 = vld [vmem:[%s3678_s8 + $0x20c] ss:$28 sps:$4 sm:$0xff]   ;;  %v2719_v21 = vld [vmem:[%s3678_s8 + $0x244] ss:$28 sps:$4 sm:$0xff]  }
 0x3d1   :  { %v1101_v24 = vadd.f32 %v1100_v23, %v1037_v20  ;;  %v1102_v25 = vpop.f32.mrb[6].mxu1  ;;  %v2714_v20 = vld [vmem:[%s3678_s8 + $0x208] ss:$28 sps:$4 sm:$0xff]   ;;  %v2722_v23 = vld [vmem:[%s3678_s8 + $0x27c] ss:$28 sps:$4 sm:$0xff]  }
 0x3d2   :  { %v1105_v26 = vmax.f32 %v1099_v22, 0.0  ;;  %v1103_v27 = vpop.f32.mrb[7].mxu1  ;;  %v2717_v22 = vld [vmem:[%s3678_s8 + $0x240] ss:$28 sps:$4 sm:$0xff]   ;;  %v2725_v25 = vld [vmem:[%s3678_s8 + $0x2b4] ss:$28 sps:$4 sm:$0xff]  }
 0x3d3   :  { %v1106_v28 = vmax.f32 %v1101_v24, 0.0  ;;  %v2720_v24 = vld [vmem:[%s3678_s8 + $0x278] ss:$28 sps:$4 sm:$0xff]   ;;  %v2728_v27 = vld [vmem:[%s3678_s8 + $0x2ec] ss:$28 sps:$4 sm:$0xff]  }
 0x3d4   :  { %v3430_v31 = vpack.c.bf16 %v1105_v26, %v1105_v26  ;;  %v2723_v26 = vld [vmem:[%s3678_s8 + $0x2b0] ss:$28 sps:$4 sm:$0xff]  }
 0x3d5   :  { %v3425_v29 = vpack.c.bf16 %v1106_v28, %v1106_v28  ;;  %v2726_v28 = vld [vmem:[%s3678_s8 + $0x2e8] ss:$28 sps:$4 sm:$0xff]  }
 0x3d7   :  { %1882 = vmatprep.mubr.bf16.mxu1 %v3425_v29  ;;  %2005 = vmatprep.mubr.bf16.mxu0 %v3425_v29 }
 0x3d8   :  { %1883 = vmatmul.mubr.bf16.vlgmr.msra.gmra.mrb[8].mxu1 %v3430_v31  ;;  %2006 = vmatmul.mubr.bf16.vlgmr.msra.gmra.mrb[4].mxu0 %v3430_v31 }
 0x3d9   :  { %1892 = vmatpush1.bf16.msra.mxu1 %v2639_v30  ;;  %1923 = vmatprep.mubr.bf16.mxu1 %v3425_v29  ;;  %v2729_v30 = vld [vmem:[%s3678_s8 + $0x320] ss:$28 sps:$4 sm:$0xff]  }
 0x3da   :  { %1893 = vmatprep.subr.bf16.mxu1 %v2644_v32  ;;  %v2734_v32 = vld [vmem:[%s3678_s8 + $0x35c] ss:$28 sps:$4 sm:$0xff]  }
 0x3dd   :  { %1894 = vmatpush1.bf16.msra.mxu1 %v2642_v33  ;;  %v2732_v33 = vld [vmem:[%s3678_s8 + $0x358] ss:$28 sps:$4 sm:$0xff]  }
 0x3de   :  { %1895 = vmatprep.subr.bf16.mxu1 %v2647_v34  ;;  %v3629_v34 = vld [vmem:[%s3679_s9] sm:$0x7f] }
 0x3e1   :  { %1896 = vmatpush1.bf16.msra.mxu1 %v2645_v35  ;;  %v1265_v35 = vsub.s32 6, %v3242_v62 }
 0x3e2   :  { %1897 = vmatprep.subr.bf16.mxu1 %v2650_v36  ;;  %v1242_v36 = vrot.slane %v3629_v34, %v3245_v63 }
 0x3e5   :  { %1898 = vmatpush1.bf16.msra.mxu1 %v2648_v37  ;;  %v1246_v37 = vrot.slane %v3629_v34, %v3251_v1 }
 0x3e6   :  { %1899 = vmatprep.subr.bf16.mxu1 %v2653_v38 }
 0x3e9   :  { %1900 = vmatpush1.bf16.msra.mxu1 %v2651_v39 }
 0x3ea   :  { %1901 = vmatprep.subr.bf16.mxu1 %v2656_v40  ;;  %v1266_v40 = vrot.slane %v3629_v34, %v1265_v35 }
 0x3ed   :  { %1902 = vmatpush1.bf16.msra.mxu1 %v2654_v41 }
 0x3ee   :  { %1903 = vmatprep.subr.bf16.mxu1 %v2659_v42 }
 0x3f1   :  { %1904 = vmatpush1.bf16.msra.mxu1 %v2657_v43 }
 0x3f2   :  { %1905 = vmatprep.subr.bf16.mxu1 %v2662_v44 }
 0x3f5   :  { %1906 = vmatpush1.bf16.msra.mxu1 %v2660_v45 }
 0x3f6   :  { %1907 = vmatprep.subr.bf16.mxu1 %v2665_v46 }
 0x3f9   :  { %1908 = vmatpush1.bf16.msra.mxu1 %v2663_v47 }
 0x3fa   :  { %1909 = vmatprep.subr.bf16.mxu1 %v2668_v48 }
 0x3fd   :  { %1910 = vmatpush1.bf16.msra.mxu1 %v2666_v49 }
 0x3fe   :  { %1911 = vmatprep.subr.bf16.mxu1 %v2671_v50 }
 0x401   :  { %1912 = vmatpush1.bf16.msra.mxu1 %v2669_v51 }
 0x402   :  { %1913 = vmatprep.subr.bf16.mxu1 %v2674_v52 }
 0x405   :  { %1914 = vmatpush1.bf16.msra.mxu1 %v2672_v53 }
 0x406   :  { %1915 = vmatprep.subr.bf16.mxu1 %v2677_v54 }
 0x409   :  { %1916 = vmatpush1.bf16.msra.mxu1 %v2675_v55 }
 0x40a   :  { %1917 = vmatprep.subr.bf16.mxu1 %v2680_v56 }
 0x40d   :  { %1918 = vmatpush1.bf16.msra.mxu1 %v2678_v57 }
 0x40e   :  { %1919 = vmatprep.subr.bf16.mxu1 %v2683_v58 }
 0x411   :  { %1920 = vmatpush1.bf16.msra.mxu1 %v2681_v59 }
 0x412   :  { %1921 = vmatprep.subr.bf16.mxu1 %v2686_v60 }
 0x415   :  { %1922 = vmatpush1.bf16.msra.mxu1 %v2684_v61 }
 0x416   :  { %1932 = vmatprep.subr.bf16.mxu1 %v2689_v0 }
 0x418   :  { %1924 = vmatmul.mubr.bf16.vlgmr.msra.gmra.mrb[12].mxu1 %v3430_v31 }
 0x419   :  { %1933 = vmatpush1.bf16.msra.mxu1 %v2687_v2  ;;  %1964 = vmatprep.mubr.bf16.mxu1 %v3425_v29  ;;  %v2731_v29 = vld [vmem:[%s3678_s8 + $0x324] ss:$28 sps:$4 sm:$0xff]   ;;  %s2813_s8 = smov [#allocation4]  }
 0x41a   :  { %1934 = vmatprep.subr.bf16.mxu1 %v2692_v3  ;;  %s2078_s9 = sshll.u32 %s2813_s8, 4  ;;  %s2079_s9 = int_to_ptr.vmem [resolvable:$true] %s2078_s9 }
 0x41b   :  { %s2763_s26 = scalar_lea.vmem %s2079_s9, 128  ;;  %p2768_p1 = scmp.lt.s32.totalorder %s2079_s9, %s2079_s9 }
 0x41c   :  { %p2764_p0 = scmp.ne.s32.totalorder %s2079_s9, %s2763_s26  ;;  %p2769_p2 = scmp.lt.s32.totalorder %s2763_s26, %s2763_s26 }
 0x41d   :  { %1935 = vmatpush1.bf16.msra.mxu1 %v2690_v4 }
 0x41e   :  { %1936 = vmatprep.subr.bf16.mxu1 %v2695_v5  ;;  %p2770_p3 = por %p2769_p2, %p2768_p1 }
 0x420   :  { %p2771_p4 = pnand %p2770_p3, %p2764_p0 }
 0x421   :  { %1937 = vmatpush1.bf16.msra.mxu1 %v2693_v6 }
 0x422   :  { %1938 = vmatprep.subr.bf16.mxu1 %v2698_v7 }
 0x425   :  { %1939 = vmatpush1.bf16.msra.mxu1 %v2696_v8 }
 0x426   :  { %1940 = vmatprep.subr.bf16.mxu1 %v2701_v9 }
 0x429   :  { %1941 = vmatpush1.bf16.msra.mxu1 %v2699_v10 }
 0x42a   :  { %1942 = vmatprep.subr.bf16.mxu1 %v2704_v11 }
 0x42d   :  { %1943 = vmatpush1.bf16.msra.mxu1 %v2702_v12 }
 0x42e   :  { %1944 = vmatprep.subr.bf16.mxu1 %v2707_v13 }
 0x431   :  { %1945 = vmatpush1.bf16.msra.mxu1 %v2705_v14 }
 0x432   :  { %1946 = vmatprep.subr.bf16.mxu1 %v2710_v15 }
 0x435   :  { %1947 = vmatpush1.bf16.msra.mxu1 %v2708_v16 }
 0x436   :  { %1948 = vmatprep.subr.bf16.mxu1 %v2713_v17 }
 0x439   :  { %1949 = vmatpush1.bf16.msra.mxu1 %v2711_v18 }
 0x43a   :  { %1950 = vmatprep.subr.bf16.mxu1 %v2716_v19 }
 0x43d   :  { %1951 = vmatpush1.bf16.msra.mxu1 %v2714_v20 }
 0x43e   :  { %1952 = vmatprep.subr.bf16.mxu1 %v2719_v21 }
 0x441   :  { %1953 = vmatpush1.bf16.msra.mxu1 %v2717_v22 }
 0x442   :  { %1954 = vmatprep.subr.bf16.mxu1 %v2722_v23 }
 0x445   :  { %1955 = vmatpush1.bf16.msra.mxu1 %v2720_v24 }
 0x446   :  { %1956 = vmatprep.subr.bf16.mxu1 %v2725_v25 }
 0x449   :  { %1957 = vmatpush1.bf16.msra.mxu1 %v2723_v26 }
 0x44a   :  { %1958 = vmatprep.subr.bf16.mxu1 %v2728_v27 }
 0x44d   :  { %1959 = vmatpush1.bf16.msra.mxu1 %v2726_v28 }
 0x44e   :  { %1960 = vmatprep.subr.bf16.mxu1 %v2731_v29 }
 0x451   :  { %1961 = vmatpush1.bf16.msra.mxu1 %v2729_v30 }
 0x452   :  { %1962 = vmatprep.subr.bf16.mxu1 %v2734_v32 }
 0x455   :  { %1963 = vmatpush1.bf16.msra.mxu1 %v2732_v33 }
 0x458   :  { %1965 = vmatmul.mubr.bf16.vlgmr.msra.gmra.mrb[16].mxu1 %v3430_v31 }
 0x4ab   :  { %v1884_v38 = vpop.f32.mrb[8].mxu1  ;;  %v2375_v39 = vpop.f32.mrb[4].mxu0 }
 0x4ac   :  { %v1885_v41 = vadd.f32 %v1884_v38, %v1242_v36  ;;  %v1886_v42 = vpop.f32.mrb[9].mxu1  ;;  %v2376_v31 = vpop.f32.mrb[5].mxu0 }
 0x4ad   :  { %v1887_v43 = vadd.f32 %v1886_v42, %v1246_v37  ;;  %v2377_v44 = vadd.f32 %v2376_v31, %v2375_v39  ;;  %v1888_v45 = vpop.f32.mrb[10].mxu1  ;;  %v2378_v46 = vpop.f32.mrb[6].mxu0 }
 0x4ae   :  { %v2330_v47 = vmul.f32 -1.442695, %v1885_v41  ;;  %v1889_v48 = vpop.f32.mrb[11].mxu1  ;;  %v2379_v49 = vpop.f32.mrb[7].mxu0 }
 0x4af   :  { %v2331_v50 = vmul.f32 -1.442695, %v1887_v43  ;;  %v2008_v51 = vadd.f32 %v2377_v44, %v1266_v40 }
 0x4b0   :  { %2735 = vpow2.f32 %v2330_v47 }
 0x4b1   :  { %2737 = vpow2.f32 %v2331_v50  ;;  %v2336_v63 = vmul.f32 -1.442695, %v2008_v51 }
 0x4b3   :  { %2739 = vpow2.f32 %v2336_v63 }
 0x4ba   :  { %v2736_v1 = vpop.eup %2735 }
 0x4bb   :  { %v2738_v52 = vpop.eup %2737  ;;  %v2034_v53 = vadd.f32 1.0, %v2736_v1 }
 0x4bc   :  { %v2035_v54 = vadd.f32 1.0, %v2738_v52 }
 0x4bd   :  { %v2740_v55 = vpop.eup %2739  ;;  %2741 = vrcp.f32 %v2034_v53 }
 0x4be   :  { %2743 = vrcp.f32 %v2035_v54  ;;  %v2040_v56 = vadd.f32 1.0, %v2740_v55 }
 0x4c0   :  { %2745 = vrcp.f32 %v2040_v56 }
 0x4c7   :  { %v2742_v57 = vpop.eup %2741 }
 0x4c8   :  { %v2744_v58 = vpop.eup %2743  ;;  %2055 = vst [vmem:[#allocation2] sm:$0xff] %v2742_v57 }
 0x4c9   :  { %2056 = vst [vmem:[#allocation2 + $0x8] sm:$0xff] %v2744_v58 }
 0x4ca   :  { %v2746_v59 = vpop.eup %2745 }
 0x4cb   :  { %2774 = shalt.err (!%p2771_p4)
}
 0x4cc   :  { %s2775_s29 = scalar_lea.hbm %s3681_s11, 128 }
 0x4cd   :  { %p2776_p5 = scmp.ne.s32.totalorder %s3681_s11, %s2775_s29  ;;  %p2779_p6 = scmp.lt.u32.totalorder %s2775_s29, %s3681_s11 }
 0x4cf   :  { %p2781_p7 = pnand %p2779_p6, %p2776_p5 }
 0x4d1   :  { %2784 = shalt.err (!%p2781_p7)
}
 0x4d2   :  { %2081 = dma.vmem_to_hbm [thread:$0]  %s2079_s9, 128, %s3681_s11, [#allocation5]   ;;  %2061 = vst.msk [vmem:[#allocation2 + $0x30] sm:$0xff] %vm668_vm0, %v2746_v59  ;;  %v1249_v60 = vsub.s32 2, %v3242_v62  ;;  %v1253_v61 = vsub.s32 3, %v3242_v62  ;;  %v1257_v17 = vsub.s32 4, %v3242_v62 }
 0x4d3   :  { %v1261_v18 = vsub.s32 5, %v3242_v62  ;;  %s2814_s11 = smov [#allocation2]  }
 0x4d4   :  { %v1250_v0 = vrot.slane %v3629_v34, %v1249_v60  ;;  %v1254_v2 = vrot.slane %v3629_v34, %v1253_v61  ;;  %v1258_v19 = vrot.slane %v3629_v34, %v1257_v17  ;;  %s2068_s16 = sshll.u32 %s2814_s11, 4  ;;  %s2069_s16 = int_to_ptr.vmem [resolvable:$true] %s2068_s16 }
 0x4d5   :  { %v1262_v20 = vrot.slane %v3629_v34, %v1261_v18  ;;  %s2785_s6 = scalar_lea.vmem %s2069_s16, 896  ;;  %p2790_p9 = scmp.lt.s32.totalorder %s2069_s16, %s2069_s16 }
 0x4d6   :  { %p2786_p8 = scmp.ne.s32.totalorder %s2069_s16, %s2785_s6  ;;  %p2791_p10 = scmp.lt.s32.totalorder %s2785_s6, %s2785_s6 }
 0x4d8   :  { %p2792_p11 = por %p2791_p10, %p2790_p9 }
 0x4da   :  { %p2793_p12 = pnand %p2792_p11, %p2786_p8 }
 0x4eb   :  { %v1925_v3 = vpop.f32.mrb[12].mxu1 }
 0x4ec   :  { %v1926_v4 = vadd.f32 %v1925_v3, %v1250_v0  ;;  %v1927_v5 = vpop.f32.mrb[13].mxu1 }
 0x4ed   :  { %v1928_v6 = vadd.f32 %v1927_v5, %v1254_v2  ;;  %v1929_v7 = vpop.f32.mrb[14].mxu1 }
 0x4ee   :  { %v2332_v8 = vmul.f32 -1.442695, %v1926_v4  ;;  %v1930_v9 = vpop.f32.mrb[15].mxu1 }
 0x4ef   :  { %v2333_v10 = vmul.f32 -1.442695, %v1928_v6 }
 0x4f0   :  { %2747 = vpow2.f32 %v2332_v8 }
 0x4f1   :  { %2749 = vpow2.f32 %v2333_v10 }
 0x4fa   :  { %v2748_v11 = vpop.eup %2747 }
 0x4fb   :  { %v2750_v12 = vpop.eup %2749  ;;  %v2036_v13 = vadd.f32 1.0, %v2748_v11 }
 0x4fc   :  { %v2037_v14 = vadd.f32 1.0, %v2750_v12 }
 0x4fd   :  { %2751 = vrcp.f32 %v2036_v13 }
 0x4fe   :  { %2753 = vrcp.f32 %v2037_v14 }
 0x507   :  { %v2752_v15 = vpop.eup %2751 }
 0x508   :  { %v2754_v16 = vpop.eup %2753  ;;  %2057 = vst [vmem:[#allocation2 + $0x10] sm:$0xff] %v2752_v15 }
 0x509   :  { %2058 = vst [vmem:[#allocation2 + $0x18] sm:$0xff] %v2754_v16 }
 0x52b   :  { %v1966_v21 = vpop.f32.mrb[16].mxu1 }
 0x52c   :  { %v1967_v22 = vadd.f32 %v1966_v21, %v1258_v19  ;;  %v1968_v23 = vpop.f32.mrb[17].mxu1 }
 0x52d   :  { %v1969_v24 = vadd.f32 %v1968_v23, %v1262_v20  ;;  %v1970_v25 = vpop.f32.mrb[18].mxu1 }
 0x52e   :  { %v2334_v26 = vmul.f32 -1.442695, %v1967_v22  ;;  %v1971_v27 = vpop.f32.mrb[19].mxu1 }
 0x52f   :  { %v2335_v28 = vmul.f32 -1.442695, %v1969_v24 }
 0x530   :  { %2755 = vpow2.f32 %v2334_v26 }
 0x531   :  { %2757 = vpow2.f32 %v2335_v28 }
 0x53a   :  { %v2756_v29 = vpop.eup %2755 }
 0x53b   :  { %v2758_v30 = vpop.eup %2757  ;;  %v2038_v32 = vadd.f32 1.0, %v2756_v29 }
 0x53c   :  { %v2039_v33 = vadd.f32 1.0, %v2758_v30 }
 0x53d   :  { %2759 = vrcp.f32 %v2038_v32 }
 0x53e   :  { %2761 = vrcp.f32 %v2039_v33 }
 0x547   :  { %v2760_v62 = vpop.eup %2759 }
 0x548   :  { %v2762_v34 = vpop.eup %2761  ;;  %2059 = vst [vmem:[#allocation2 + $0x20] sm:$0xff] %v2760_v62 }
 0x549   :  { %2060 = vst [vmem:[#allocation2 + $0x28] sm:$0xff] %v2762_v34 }
 0x54a   :  { %2796 = shalt.err (!%p2793_p12)
}
 0x54b   :  { %s2797_s19 = scalar_lea.hbm %s3680_s10, 896 }
 0x54c   :  { %p2798_p13 = scmp.ne.s32.totalorder %s3680_s10, %s2797_s19  ;;  %p2801_p0 = scmp.lt.u32.totalorder %s2797_s19, %s3680_s10 }
 0x54e   :  { %p2803_p1 = pnand %p2801_p0, %p2798_p13 }
 0x550   :  { %2806 = shalt.err (!%p2803_p1)
}
 0x551   :  { %2071 = dma.vmem_to_hbm [thread:$0]  %s2069_s16, 896, %s3680_s10, [#allocation3]  }
 0x552   :  { %2807 = dma.done.wait [#allocation3], 896  }
 0x553   :  { %2808 = vsyncadd [#allocation3], 4294966400 }
 0x554   :  { %2809 = dma.done.wait [#allocation5], 128  }
 0x555   :  { %2810 = vsyncadd [#allocation5], 4294967168 }
 0x556   :  { %2088 = vsyncpa [#allocation3], 1 }
 0x557   :  { %2089 = vsyncpa [#allocation5], 1 }

</bundles_post_ra>
